<compile_context>
chip_gen: v6e
topology: v6e:2x2x1
jax: 0.10.0
libtpu: 0.0.40
codegen_flags: <defaults>
</compile_context>

<pallas_src>
import jax
import jax.numpy as jnp
from jax import lax
from jax.experimental import pallas as pl
from jax.experimental.pallas import tpu as pltpu

EPS = 1e-5                          # nn.BatchNorm2d default eps
LANES = 128                         # vreg lane count -> lane-dense last dim
MAX_TILE_BYTES = 2 * 1024 * 1024    # ~2 MiB per pipelined tile buffer
N_SPLITS = 2                        # v7x has 2 TensorCores; harmless on v5e/v6e
_VMEM_LIMIT = 32 * 1024 * 1024


def _round_up(a, b):
    return ((a + b - 1) // b) * b


def _tiling(n_rows, itemsize):
    """Pick (tile_rows, total_tiles, core_splits) for a (n_rows, 128) view."""
    sub = max(8, 32 // itemsize)          # sublane multiple: 8 f32 / 16 bf16 / 32 i8
    max_rows = max(sub, MAX_TILE_BYTES // (LANES * itemsize))
    tiles_raw = -(-n_rows // max_rows)
    if tiles_raw <= 1:
        # Single tile: use the exact row count (full-dim block => no masking).
        return n_rows, 1, 1
    tiles_total = _round_up(tiles_raw, N_SPLITS)
    tile_r = _round_up(-(-n_rows // tiles_total), sub)
    return tile_r, tiles_total, N_SPLITS


@jax.jit
def m_forward(x, params):
    """x: [N, 1, H, W] (NCHW); params: f32[12] =
    [w1, b1, g1, be1, w2, b2, g2, be2, w3, b3, g3, be3]."""
    N, C, H, W = x.shape
    assert C == 1, "module M is defined for a single channel"
    total = N * C * H * W
    itemsize = jnp.dtype(x.dtype).itemsize

    # Lane-dense 2-D view; a pure (free) reshape when total is a lane multiple.
    rem = total % LANES
    if rem:
        # TODO(synk): totals that are not a multiple of 128 still pay one pad
        # copy + final slice; handling the ragged lane tail in-kernel would
        # need a non-rectangular view.
        xf = jnp.pad(x.reshape(-1), (0, LANES - rem))
    else:
        xf = x.reshape(-1)
    n_rows = xf.shape[0] // LANES
    x2d = xf.reshape(n_rows, LANES)

    tile_r, tiles_total, n_splits = _tiling(n_rows, itemsize)
    tiles_per_core = tiles_total // n_splits
    tiles_apply = -(-n_rows // tile_r)        # exact cover; last block may be partial
    last_block = tiles_apply - 1
    needs_mask = tiles_total * tile_r != n_rows
    inv_n = 1.0 / float(total)                # true element count (pad lanes are zero)

    # ---------------- pass 1: per-core partial sum / sum-of-squares ----------------
    def reduce_kernel(x_ref, acc_ref):
        i = pl.program_id(1)

        @pl.when(i == 0)
        def _init():
            acc_ref[...] = jnp.zeros_like(acc_ref)

        row0 = (pl.program_id(0) * tiles_per_core + i) * tile_r

        def accumulate(xt):
            if tile_r % 8 == 0:
                # Whole-vreg VPU adds: (tile_r, 128) -> (tile_r//8, 8, 128), sum axis 0.
                x3 = xt.reshape(tile_r // 8, 8, LANES)
                acc_ref[0:8, :] = acc_ref[0:8, :] + jnp.sum(x3, axis=0)
                acc_ref[8:16, :] = acc_ref[8:16, :] + jnp.sum(x3 * x3, axis=0)
            else:
                # Only reachable in the tiny single-tile case (tile_r == n_rows < 8k).
                acc_ref[0:1, :] = acc_ref[0:1, :] + jnp.sum(xt, axis=0, keepdims=True)
                acc_ref[8:9, :] = acc_ref[8:9, :] + jnp.sum(xt * xt, axis=0, keepdims=True)

        if not needs_mask:
            accumulate(x_ref[...].astype(jnp.float32))
        else:
            @pl.when(row0 + tile_r <= n_rows)        # interior tile: no masking cost
            def _full():
                accumulate(x_ref[...].astype(jnp.float32))

            @pl.when(row0 + tile_r > n_rows)         # ragged-tail (or fully OOB) tile
            def _tail():
                xt = x_ref[...].astype(jnp.float32)
                rows = row0 + lax.broadcasted_iota(jnp.int32, xt.shape, 0)
                accumulate(jnp.where(rows < n_rows, xt, 0.0))

    stats = pl.pallas_call(
        reduce_kernel,
        out_shape=jax.ShapeDtypeStruct((n_splits, 16, LANES), jnp.float32),
        grid=(n_splits, tiles_per_core),
        in_specs=[pl.BlockSpec(
            (tile_r, LANES),
            lambda c, i: (jnp.minimum(c * tiles_per_core + i, last_block), 0))],
        out_specs=pl.BlockSpec((None, 16, LANES), lambda c, i: (c, 0, 0)),
        compiler_params=pltpu.CompilerParams(
            dimension_semantics=("parallel", "arbitrary"),
            vmem_limit_bytes=_VMEM_LIMIT),
        cost_estimate=pl.CostEstimate(
            flops=3 * n_rows * LANES,
            transcendentals=0,
            bytes_accessed=n_rows * LANES * itemsize + n_splits * 16 * LANES * 4),
    )(x2d)

    # -------- pass 2: in-kernel stats finalize + scalar chain + fused affine -------
    def apply_kernel(stats_ref, p_ref, x_ref, o_ref):
        s = stats_ref[...]                                    # (n_splits, 16, 128)
        mean = jnp.sum(s[:, 0:8, :]) * inv_n
        # TODO(synk): E[x^2]-E[x]^2 can cancel badly if |mean| >> std; a shifted
        # sum-of-squares would be more robust for strongly offset activations.
        var = jnp.maximum(jnp.sum(s[:, 8:16, :]) * inv_n - mean * mean, 0.0)
        w1, g1 = p_ref[0], p_ref[2]
        w2, g2 = p_ref[4], p_ref[6]
        w3, g3, be3 = p_ref[8], p_ref[10], p_ref[11]
        a1 = g1 * (w1 * lax.rsqrt(w1 * (w1 * var) + EPS))
        t2 = w2 * a1
        a2 = g2 * (t2 * lax.rsqrt(t2 * t2 * var + EPS))
        t3 = w3 * a2
        scale = g3 * (t3 * lax.rsqrt(t3 * t3 * var + EPS))
        shift = be3 - scale * mean
        o_ref[...] = (x_ref[...].astype(jnp.float32) * scale + shift).astype(o_ref.dtype)

    out2d = pl.pallas_call(
        apply_kernel,
        out_shape=jax.ShapeDtypeStruct((n_rows, LANES), x.dtype),
        grid=(tiles_apply,),
        in_specs=[
            pl.BlockSpec((n_splits, 16, LANES), lambda i: (0, 0, 0)),   # partial stats
            pl.BlockSpec(memory_space=pltpu.MemorySpace.SMEM),          # 12 raw params
            pl.BlockSpec((tile_r, LANES), lambda i: (i, 0)),            # activation tile
        ],
        out_specs=pl.BlockSpec((tile_r, LANES), lambda i: (i, 0)),
        compiler_params=pltpu.CompilerParams(
            dimension_semantics=("parallel",),
            vmem_limit_bytes=_VMEM_LIMIT),
        cost_estimate=pl.CostEstimate(
            flops=2 * n_rows * LANES,
            transcendentals=3 * tiles_apply,
            bytes_accessed=2 * n_rows * LANES * itemsize),
    )(stats, params.astype(jnp.float32), x2d)

    if rem:
        return out2d.reshape(-1)[:total].reshape(N, C, H, W)
    return out2d.reshape(N, C, H, W)


def m_forward_ref(x, params):
    """Pure-JAX reference: explicit per-stage conv/BN chain (PyTorch semantics)."""
    p = [params[i] for i in range(12)]

    def bn(t, g, b):
        m = jnp.mean(t, axis=(0, 2, 3), keepdims=True)
        v = jnp.mean((t - m) ** 2, axis=(0, 2, 3), keepdims=True)
        return g * (t - m) / jnp.sqrt(v + EPS) + b

    x = p[0] * x + p[1]        # conv1
    x = bn(x, p[2], p[3])      # bn1
    x = p[4] * x + p[5]        # conv2
    x = bn(x, p[6], p[7])      # nested BatchNorm2d
    x = p[8] * x + p[9]        # nested Conv2d
    x = bn(x, p[10], p[11])    # wrapped BatchNorm2d
    return x


if __name__ == "__main__":
    key = jax.random.PRNGKey(0)
    kx, kp = jax.random.split(key)

    # 3 convs (w, b) + 3 batchnorms (gamma, beta) -> 12 scalars;
    # nudge conv weights and gammas toward 1.
    params = jax.random.normal(kp, (12,), dtype=jnp.float32) * 0.5 + jnp.array(
        [1.0, 0.0, 1.0, 0.0, 1.0, 0.0, 1.0, 0.0, 1.0, 0.0, 1.0, 0.0],
        dtype=jnp.float32)

    test_shapes = [
        (2, 1, 16, 16),     # small primary shape (single full-dim tile)
        (2, 1, 200, 200),   # single tile, rows not a multiple of 8, pad-free now
        (2, 1, 592, 692),   # multi-tile: 2-way core split + masked ragged tail
    ]
    for idx, shp in enumerate(test_shapes):
        x = jax.random.normal(jax.random.PRNGKey(idx), shp, dtype=jnp.float32)
        out = jax.block_until_ready(m_forward(x, params))
        ref = m_forward_ref(x, params)
        if out.shape != x.shape or not jnp.allclose(out, ref, atol=1e-4, rtol=1e-4):
            err = float(jnp.max(jnp.abs(out - ref)))
            raise AssertionError(
                f"Pallas kernel mismatch for shape {shp}: max abs err {err}")

    print("KERNEL_OK")
</pallas_src>

<mosaic_0001>
module attributes {stable_mosaic.version = 11 : i64} {
  func.func @apply_kernel(%arg0: i32, %arg1: memref<1x16x128xf32, #tpu.memory_space<vmem>>, %arg2: memref<12xf32, #tpu.memory_space<smem>>, %arg3: memref<4x128xf32, #tpu.memory_space<vmem>>, %arg4: memref<4x128xf32, #tpu.memory_space<vmem>>) attributes {dimension_semantics = [#tpu.dimension_semantics<parallel>], iteration_bounds = array<i64: 1>, scalar_prefetch = 0 : i64, scratch_operands = 0 : i64, tpu.core_type = #tpu.core_type<tc>, window_params = [{pipeline_mode = #tpu.pipeline_mode<synchronous>, transform_indices = @transform_0, window_bounds = array<i64: 1, 16, 128>}, {transform_indices = @transform_1, window_bounds = array<i64: 12>}, {transform_indices = @transform_2, window_bounds = array<i64: 4, 128>}, {transform_indices = @transform_3, window_bounds = array<i64: 4, 128>}]} {
    %c0 = arith.constant 0 : index
    %c0_0 = arith.constant 0 : index
    %c0_1 = arith.constant 0 : index
    %0 = vector.load %arg1[%c0, %c0_0, %c0_1] : memref<1x16x128xf32, #tpu.memory_space<vmem>>, vector<1x16x128xf32>
    %1 = vector.extract_strided_slice %0 {offsets = [0, 0, 0], sizes = [1, 8, 128], strides = [1, 1, 1]} : vector<1x16x128xf32> to vector<1x8x128xf32>
    %2 = vector.shape_cast %1 : vector<1x8x128xf32> to vector<1x1x8x128xf32>
    %cst = arith.constant dense<0.000000e+00> : vector<1xf32>
    %3 = vector.multi_reduction <add>, %2, %cst [1, 2, 3] : vector<1x1x8x128xf32> to vector<1xf32>
    %4 = vector.shape_cast %3 : vector<1xf32> to vector<1x1x1x1xf32>
    %5 = vector.extract %4[0, 0, 0, 0] : f32 from vector<1x1x1x1xf32>
    %cst_2 = arith.constant 0.001953125 : f32
    %6 = arith.mulf %5, %cst_2 : f32
    %7 = vector.extract_strided_slice %0 {offsets = [0, 8, 0], sizes = [1, 8, 128], strides = [1, 1, 1]} : vector<1x16x128xf32> to vector<1x8x128xf32>
    %8 = vector.shape_cast %7 : vector<1x8x128xf32> to vector<1x1x8x128xf32>
    %cst_3 = arith.constant dense<0.000000e+00> : vector<1xf32>
    %9 = vector.multi_reduction <add>, %8, %cst_3 [1, 2, 3] : vector<1x1x8x128xf32> to vector<1xf32>
    %10 = vector.shape_cast %9 : vector<1xf32> to vector<1x1x1x1xf32>
    %11 = vector.extract %10[0, 0, 0, 0] : f32 from vector<1x1x1x1xf32>
    %cst_4 = arith.constant 0.001953125 : f32
    %12 = arith.mulf %11, %cst_4 : f32
    %13 = arith.mulf %6, %6 : f32
    %14 = arith.subf %12, %13 : f32
    %cst_5 = arith.constant 0.000000e+00 : f32
    %15 = arith.maximumf %14, %cst_5 : f32
    %c0_6 = arith.constant 0 : index
    %16 = memref.load %arg2[%c0_6] : memref<12xf32, #tpu.memory_space<smem>>
    %c2 = arith.constant 2 : index
    %17 = memref.load %arg2[%c2] : memref<12xf32, #tpu.memory_space<smem>>
    %c4 = arith.constant 4 : index
    %18 = memref.load %arg2[%c4] : memref<12xf32, #tpu.memory_space<smem>>
    %c6 = arith.constant 6 : index
    %19 = memref.load %arg2[%c6] : memref<12xf32, #tpu.memory_space<smem>>
    %c8 = arith.constant 8 : index
    %20 = memref.load %arg2[%c8] : memref<12xf32, #tpu.memory_space<smem>>
    %c10 = arith.constant 10 : index
    %21 = memref.load %arg2[%c10] : memref<12xf32, #tpu.memory_space<smem>>
    %c11 = arith.constant 11 : index
    %22 = memref.load %arg2[%c11] : memref<12xf32, #tpu.memory_space<smem>>
    %23 = arith.mulf %16, %15 : f32
    %24 = arith.mulf %16, %23 : f32
    %cst_7 = arith.constant 9.99999974E-6 : f32
    %25 = arith.addf %24, %cst_7 : f32
    %26 = math.rsqrt %25 : f32
    %27 = arith.mulf %16, %26 : f32
    %28 = arith.mulf %17, %27 : f32
    %29 = arith.mulf %18, %28 : f32
    %30 = arith.mulf %29, %29 : f32
    %31 = arith.mulf %30, %15 : f32
    %cst_8 = arith.constant 9.99999974E-6 : f32
    %32 = arith.addf %31, %cst_8 : f32
    %33 = math.rsqrt %32 : f32
    %34 = arith.mulf %29, %33 : f32
    %35 = arith.mulf %19, %34 : f32
    %36 = arith.mulf %20, %35 : f32
    %37 = arith.mulf %36, %36 : f32
    %38 = arith.mulf %37, %15 : f32
    %cst_9 = arith.constant 9.99999974E-6 : f32
    %39 = arith.addf %38, %cst_9 : f32
    %40 = math.rsqrt %39 : f32
    %41 = arith.mulf %36, %40 : f32
    %42 = arith.mulf %21, %41 : f32
    %43 = arith.mulf %42, %6 : f32
    %44 = arith.subf %22, %43 : f32
    %c0_10 = arith.constant 0 : index
    %c0_11 = arith.constant 0 : index
    %45 = vector.load %arg3[%c0_10, %c0_11] : memref<4x128xf32, #tpu.memory_space<vmem>>, vector<4x128xf32>
    %46 = vector.broadcast %42 : f32 to vector<4x128xf32>
    %47 = arith.mulf %45, %46 : vector<4x128xf32>
    %48 = vector.broadcast %44 : f32 to vector<4x128xf32>
    %49 = arith.addf %47, %48 : vector<4x128xf32>
    %c0_12 = arith.constant 0 : index
    %c0_13 = arith.constant 0 : index
    %50 = vector.load %arg4[%c0_12, %c0_13] : memref<4x128xf32, #tpu.memory_space<vmem>>, vector<4x128xf32>
    tpu.vector_store %arg4[%c0_12, %c0_13], %49 {strides = array<i32>} : memref<4x128xf32, #tpu.memory_space<vmem>>, vector<4x128xf32>,
    return
  }
  func.func @transform_0(%arg0: i32) -> (i32, i32, i32) {
    %c0_i32 = arith.constant 0 : i32
    %c0_i32_0 = arith.constant 0 : i32
    %c0_i32_1 = arith.constant 0 : i32
    %c0_i32_2 = arith.constant 0 : i32
    return %c0_i32, %c0_i32_0, %c0_i32_1 : i32, i32, i32
  }
  func.func @transform_1(%arg0: i32) -> i32 {
    %c0_i32 = arith.constant 0 : i32
    %c0_i32_0 = arith.constant 0 : i32
    return %c0_i32 : i32
  }
  func.func @transform_2(%arg0: i32) -> (i32, i32) {
    %c0_i32 = arith.constant 0 : i32
    %c0_i32_0 = arith.constant 0 : i32
    return %arg0, %c0_i32 : i32, i32
  }
  func.func @transform_3(%arg0: i32) -> (i32, i32) {
    %c0_i32 = arith.constant 0 : i32
    %c0_i32_0 = arith.constant 0 : i32
    return %arg0, %c0_i32 : i32, i32
  }
}

module attributes {stable_mosaic.version = 11 : i64} {
  func.func @reduce_kernel(%arg0: i32, %arg1: i32, %arg2: memref<4x128xf32, #tpu.memory_space<vmem>>, %arg3: memref<1x16x128xf32, #tpu.memory_space<vmem>>) attributes {dimension_semantics = [#tpu.dimension_semantics<parallel>, #tpu.dimension_semantics<arbitrary>], iteration_bounds = array<i64: 1, 1>, scalar_prefetch = 0 : i64, scratch_operands = 0 : i64, tpu.core_type = #tpu.core_type<tc>, window_params = [{transform_indices = @transform_0, window_bounds = array<i64: 4, 128>}, {transform_indices = @transform_1, window_bounds = array<i64: 1, 16, 128>}]} {
    %c0_i32 = arith.constant 0 : i32
    %0 = arith.cmpi eq, %arg1, %c0_i32 : i32
    %1 = arith.extui %0 : i1 to i32
    %c0_i32_0 = arith.constant 0 : i32
    %2 = arith.cmpi ne, %1, %c0_i32_0 : i32
    scf.if %2 {
      %cst_14 = arith.constant 0.000000e+00 : f32
      %21 = vector.broadcast %cst_14 : f32 to vector<16x128xf32>
      %c0_15 = arith.constant 0 : index
      %c0_16 = arith.constant 0 : index
      %c0_17 = arith.constant 0 : index
      %22 = vector.load %arg3[%c0_15, %c0_16, %c0_17] : memref<1x16x128xf32, #tpu.memory_space<vmem>>, vector<1x16x128xf32>
      %23 = vector.shape_cast %22 : vector<1x16x128xf32> to vector<16x128xf32>
      %24 = vector.shape_cast %21 : vector<16x128xf32> to vector<1x16x128xf32>
      tpu.vector_store %arg3[%c0_15, %c0_16, %c0_17], %24 {strides = array<i32>} : memref<1x16x128xf32, #tpu.memory_space<vmem>>, vector<1x16x128xf32>,
    } else {
    }
    %c0 = arith.constant 0 : index
    %c0_1 = arith.constant 0 : index
    %3 = vector.load %arg2[%c0, %c0_1] : memref<4x128xf32, #tpu.memory_space<vmem>>, vector<4x128xf32>
    %c0_2 = arith.constant 0 : index
    %c0_3 = arith.constant 0 : index
    %c0_4 = arith.constant 0 : index
    %4 = vector.load %arg3[%c0_2, %c0_3, %c0_4] : memref<1x16x128xf32, #tpu.memory_space<vmem>>, vector<1x1x128xf32>
    %5 = vector.shape_cast %4 : vector<1x1x128xf32> to vector<1x128xf32>
    %cst = arith.constant dense<0.000000e+00> : vector<128xf32>
    %6 = vector.multi_reduction <add>, %3, %cst [0] : vector<4x128xf32> to vector<128xf32>
    %7 = vector.shape_cast %6 : vector<128xf32> to vector<1x128xf32>
    %8 = arith.addf %5, %7 : vector<1x128xf32>
    %c0_5 = arith.constant 0 : index
    %c0_6 = arith.constant 0 : index
    %c0_7 = arith.constant 0 : index
    %9 = vector.load %arg3[%c0_5, %c0_6, %c0_7] : memref<1x16x128xf32, #tpu.memory_space<vmem>>, vector<1x1x128xf32>
    %10 = vector.shape_cast %9 : vector<1x1x128xf32> to vector<1x128xf32>
    %11 = vector.shape_cast %8 : vector<1x128xf32> to vector<1x1x128xf32>
    tpu.vector_store %arg3[%c0_5, %c0_6, %c0_7], %11 {strides = array<i32>} : memref<1x16x128xf32, #tpu.memory_space<vmem>>, vector<1x1x128xf32>,
    %c0_8 = arith.constant 0 : index
    %c8 = arith.constant 8 : index
    %c0_9 = arith.constant 0 : index
    %12 = vector.load %arg3[%c0_8, %c8, %c0_9] : memref<1x16x128xf32, #tpu.memory_space<vmem>>, vector<1x1x128xf32>
    %13 = vector.shape_cast %12 : vector<1x1x128xf32> to vector<1x128xf32>
    %14 = arith.mulf %3, %3 : vector<4x128xf32>
    %cst_10 = arith.constant dense<0.000000e+00> : vector<128xf32>
    %15 = vector.multi_reduction <add>, %14, %cst_10 [0] : vector<4x128xf32> to vector<128xf32>
    %16 = vector.shape_cast %15 : vector<128xf32> to vector<1x128xf32>
    %17 = arith.addf %13, %16 : vector<1x128xf32>
    %c0_11 = arith.constant 0 : index
    %c8_12 = arith.constant 8 : index
    %c0_13 = arith.constant 0 : index
    %18 = vector.load %arg3[%c0_11, %c8_12, %c0_13] : memref<1x16x128xf32, #tpu.memory_space<vmem>>, vector<1x1x128xf32>
    %19 = vector.shape_cast %18 : vector<1x1x128xf32> to vector<1x128xf32>
    %20 = vector.shape_cast %17 : vector<1x128xf32> to vector<1x1x128xf32>
    tpu.vector_store %arg3[%c0_11, %c8_12, %c0_13], %20 {strides = array<i32>} : memref<1x16x128xf32, #tpu.memory_space<vmem>>, vector<1x1x128xf32>,
    return
  }
  func.func @transform_0(%arg0: i32, %arg1: i32) -> (i32, i32) {
    %c1_i32 = arith.constant 1 : i32
    %0 = arith.muli %arg0, %c1_i32 : i32
    %1 = arith.addi %0, %arg1 : i32
    %c0_i32 = arith.constant 0 : i32
    %2 = arith.minsi %1, %c0_i32 : i32
    %c0_i32_0 = arith.constant 0 : i32
    %c0_i32_1 = arith.constant 0 : i32
    return %2, %c0_i32_0 : i32, i32
  }
  func.func @transform_1(%arg0: i32, %arg1: i32) -> (i32, i32, i32) {
    %c0_i32 = arith.constant 0 : i32
    %c0_i32_0 = arith.constant 0 : i32
    %c0_i32_1 = arith.constant 0 : i32
    return %arg0, %c0_i32, %c0_i32_0 : i32, i32, i32
  }
}

</mosaic_0001>

<bundles_post_ra>
// kernel: m_forward.3
= control target key start
LH: loop header
LB: loop body
LE: loop exit
PB: predicated region body
PF: predicated region fallthrough
CT: control target
= control target key end

     0   :  { %8 = vsyncpa [#allocation3], 0  ;;  %s178_s0 = inlined_call_operand.vmem [shape: f32[1,16,128], index: 0, kind: input, shape index: {}]   ;;  %s179_s1 = inlined_call_operand.vmem [shape: f32[12], index: 1, kind: input, shape index: {}]   ;;  %s180_s2 = inlined_call_operand.vmem [shape: f32[4,128], index: 2, kind: input, shape index: {}]   ;;  %s181_s3 = inlined_call_operand.vmem [shape: f32[4,128], index: 3, kind: output, shape index: {}]  }
   0x1   :  { %s17_s14 = sshll.u32 %s179_s1, 4  ;;  %s18_s14 = int_to_ptr.vmem [resolvable:$true] %s17_s14 }
   0x2   :  { %s122_s15 = scalar_lea.vmem %s18_s14, 16  ;;  %p127_p1 = scmp.lt.s32.totalorder %s18_s14, %s18_s14 }
   0x3   :  { %p123_p0 = scmp.ne.s32.totalorder %s18_s14, %s122_s15  ;;  %p128_p2 = scmp.lt.s32.totalorder %s122_s15, %s122_s15 }
   0x5   :  { %p129_p3 = por %p128_p2, %p127_p1 }
   0x7   :  { %p130_p4 = pnand %p129_p3, %p123_p0 }
   0x9   :  { %133 = shalt.err (!%p130_p4)
}
   0xa   :  { %s136_s16 = smov [#allocation2]  }
   0xb   :  { %20 = dma.vmem_to_smem %s18_s14, 16, %s136_s16, [#allocation3]  }
   0xc   :  { %134 = dma.done.wait [#allocation3], 16  }
   0xd   :  { %135 = vsyncadd [#allocation3], 4294967280 }
   0xe   :  { %26 = sfence }
   0xf   :  { %v27_v0 = vld [vmem:[%s178_s0] sm:$0xff]  ;;  %v28_v1 = vld [vmem:[%s178_s0 + $0x8] sm:$0xff]  ;;  %s52_s0 = sld [smem:[#allocation2]]  ;;  %s137_s26 = smov 0.0  }
  0x10   :  { %29 = vadd.xlane.f32.xlu0 %v27_v0  ;;  %s98_s4 = sld [smem:[#allocation2 + $0x2]]  ;;  %v87_v22 = vld [vmem:[%s180_s2] sm:$0xf] }
  0x11   :  { %s99_s5 = sld [smem:[#allocation2 + $0x4]] }
  0x12   :  { %s100_s13 = sld [smem:[#allocation2 + $0x6]] }
  0x13   :  { %s101_s14 = sld [smem:[#allocation2 + $0x8]] }
  0x14   :  { %39 = vadd.xlane.f32.xlu0 %v28_v1 }
  0x99   :  { %v30_v2 = vpop.xlane.xlu0 %29 }
  0x9a   :  { %v31_v3 = vrot.slane %v30_v2, 4 }
  0x9c   :  { %v32_v4 = vadd.f32 %v31_v3, %v30_v2 }
  0x9d   :  { %v40_v5 = vpop.xlane.xlu0 %39 }
  0x9e   :  { %v33_v6 = vrot.slane %v32_v4, 2  ;;  %v41_v7 = vrot.slane %v40_v5, 4 }
  0xa0   :  { %v42_v8 = vadd.f32 %v41_v7, %v40_v5  ;;  %v34_v9 = vadd.f32 %v33_v6, %v32_v4 }
  0xa2   :  { %v43_v10 = vrot.slane %v42_v8, 2  ;;  %v35_v11 = vrot.slane %v34_v9, 1 }
  0xa4   :  { %v44_v12 = vadd.f32 %v43_v10, %v42_v8  ;;  %v36_v13 = vadd.f32 %v35_v11, %v34_v9 }
  0xa6   :  { %104 = vpush %v36_v13  ;;  %v45_v14 = vrot.slane %v44_v12, 1 }
  0xa8   :  { %v46_v15 = vadd.f32 %v45_v14, %v44_v12 }
  0xaa   :  { %106 = vpush %v46_v15 }
  0xd7   :  { %s105_s20 = spop %104 }
  0xd8   :  { %s167_s21 = smul.f32 0.001953125, %s105_s20 }
  0xda   :  { %s49_s22 = smul.f32 %s167_s21, %s167_s21 }
  0xdb   :  { %s107_s23 = spop %106 }
  0xdc   :  { %s48_s24 = smul.f32 0.001953125, %s107_s23 }
  0xde   :  { %s50_s25 = ssub.f32 %s48_s24, %s49_s22 }
  0xdf   :  { %s103_s22 = sld [smem:[#allocation2 + $0xb]] }
  0xe0   :  { %s51_s27 = smax.f32 %s137_s26, %s50_s25 }
  0xe1   :  { %s59_s28 = smul.f32 %s52_s0, %s51_s27 }
  0xe3   :  { %s60_s29 = smul.f32 %s59_s28, %s52_s0 }
  0xe5   :  { %s61_s30 = sadd.f32 1e-05, %s60_s29 }
  0xe7   :  { %v62_v16 = vstv %s61_s30 }
  0xe8   :  { %116 = vrsqrt.f32 %v62_v16 }
  0xf5   :  { %v117_v17 = vpop.eup %116 }
  0xf6   :  { %108 = vpush %v117_v17 }
 0x127   :  { %s109_s6 = spop %108 }
 0x128   :  { %s65_s7 = smul.f32 %s109_s6, %s52_s0  ;;  %s102_s0 = sld [smem:[#allocation2 + $0xa]] }
 0x12a   :  { %s66_s8 = smul.f32 %s98_s4, %s65_s7 }
 0x12c   :  { %s67_s9 = smul.f32 %s99_s5, %s66_s8 }
 0x12e   :  { %s68_s10 = smul.f32 %s67_s9, %s67_s9 }
 0x130   :  { %s69_s11 = smul.f32 %s68_s10, %s51_s27 }
 0x132   :  { %s70_s12 = sadd.f32 1e-05, %s69_s11 }
 0x134   :  { %v71_v18 = vstv %s70_s12 }
 0x135   :  { %118 = vrsqrt.f32 %v71_v18 }
 0x142   :  { %v119_v19 = vpop.eup %118 }
 0x143   :  { %110 = vpush %v119_v19 }
 0x174   :  { %s111_s15 = spop %110 }
 0x175   :  { %s74_s16 = smul.f32 %s111_s15, %s67_s9 }
 0x177   :  { %s75_s17 = smul.f32 %s100_s13, %s74_s16 }
 0x179   :  { %s76_s18 = smul.f32 %s101_s14, %s75_s17 }
 0x17b   :  { %s77_s19 = smul.f32 %s76_s18, %s76_s18 }
 0x17d   :  { %s78_s1 = smul.f32 %s77_s19, %s51_s27 }
 0x17f   :  { %s79_s20 = sadd.f32 1e-05, %s78_s1 }
 0x181   :  { %v80_v20 = vstv %s79_s20 }
 0x182   :  { %120 = vrsqrt.f32 %v80_v20 }
 0x18f   :  { %v121_v21 = vpop.eup %120 }
 0x190   :  { %112 = vpush %v121_v21 }
 0x1c1   :  { %s113_s23 = spop %112 }
 0x1c2   :  { %s83_s24 = smul.f32 %s113_s23, %s76_s18 }
 0x1c4   :  { %s84_s25 = smul.f32 %s102_s0, %s83_s24 }
 0x1c6   :  { %s85_s26 = smul.f32 %s84_s25, %s167_s21  ;;  %v88_v23 = vstv %s84_s25 }
 0x1c7   :  { %v89_v24 = vmul.f32 %v88_v23, %v87_v22 }
 0x1c8   :  { %s86_s30 = ssub.f32 %s103_s22, %s85_s26 }
 0x1ca   :  { %v90_v25 = vstv %s86_s30 }
 0x1cb   :  { %v91_v26 = vadd.f32 %v90_v25, %v89_v24 }
 0x1cd   :  { %92 = vst [vmem:[%s181_s3] sm:$0xf] %v91_v26 }
 0x1ce   :  { %97 = vsyncpa [#allocation3], 1 }

// kernel: m_forward.2
= control target key start
LH: loop header
LB: loop body
LE: loop exit
PB: predicated region body
PF: predicated region fallthrough
CT: control target
= control target key end

     0   :  { %vm43_vm0 = vcmask 1043456   ;;  %v75_v0 = vmov 0.0   ;;  %s107_s1 = inlined_call_operand.vmem [shape: f32[1,16,128], index: 1, kind: output, shape index: {}]   ;;  %s108_s0 = inlined_call_operand.vmem [shape: f32[4,128], index: 0, kind: input, shape index: {}]  }
   0x1   :  { %39 = vst [vmem:[%s107_s1] sm:$0xff] %v75_v0  ;;  %40 = vst [vmem:[%s107_s1 + $0x8] sm:$0xff] %v75_v0  ;;  %v41_v1 = vld [vmem:[%s108_s0] sm:$0xf] }
   0x2   :  { %v44_v2 = vsel %vm43_vm0, %v41_v1, 0.0  ;;  %v54_v3 = vmul.f32 %v41_v1, %v41_v1 }
   0x3   :  { %v45_v4 = vrot.slane %v44_v2, 4 }
   0x4   :  { %v55_v5 = vsel %vm43_vm0, %v54_v3, 0.0 }
   0x5   :  { %v46_v6 = vadd.f32 %v45_v4, %v44_v2  ;;  %v56_v7 = vrot.slane %v55_v5, 4 }
   0x7   :  { %v47_v8 = vrot.slane %v46_v6, 2  ;;  %v57_v9 = vadd.f32 %v56_v7, %v55_v5 }
   0x8   :  { %v42_v14 = vld [vmem:[%s107_s1] sm:$0x1]  ;;  %v53_v17 = vld [vmem:[%s107_s1 + $0x8] sm:$0x1] }
   0x9   :  { %v48_v10 = vadd.f32 %v47_v8, %v46_v6  ;;  %v58_v11 = vrot.slane %v57_v9, 2 }
   0xb   :  { %v49_v12 = vrot.slane %v48_v10, 1  ;;  %v59_v13 = vadd.f32 %v58_v11, %v57_v9 }
   0xd   :  { %v50_v15 = vadd.f32 %v49_v12, %v48_v10  ;;  %v60_v16 = vrot.slane %v59_v13, 1 }
   0xf   :  { %v51_v18 = vadd.f32 %v50_v15, %v42_v14  ;;  %v61_v19 = vadd.f32 %v60_v16, %v59_v13 }
  0x11   :  { %52 = vst [vmem:[%s107_s1] sm:$0x1] %v51_v18  ;;  %v62_v20 = vadd.f32 %v61_v19, %v53_v17 }
  0x13   :  { %63 = vst [vmem:[%s107_s1 + $0x8] sm:$0x1] %v62_v20 }

</bundles_post_ra>
